<compile_context>
chip_gen: v7x
topology: tpu7x:2x2x1
jax: 0.10.0
libtpu: 0.0.40
codegen_flags: <defaults>
</compile_context>

<pallas_src>
import functools

import jax
import jax.numpy as jnp
from jax.experimental import pallas as pl
from jax.experimental.pallas import tpu as pltpu

LANES = 128
SUBLANES = 8
ROW_ALIGN = 32          # block_rows multiple of 32 covers f32/bf16/int8 sublane packing
# Pad value for logits: with x = -1e4, t = 0:
#   bce = max(x,0) - x*t + log1p(exp(-|x|)) = 0,  pt = 1,  focal = 0 exactly,
# so padded elements contribute nothing and no in-kernel mask is needed.
_PAD_LOGIT = -1.0e4


def _device_kind():
    try:
        return jax.devices()[0].device_kind.lower()
    except Exception:  # pragma: no cover - be robust off-TPU
        return ""


def _chip_params(rows_raw):
    """(num_splits, max_block_rows) tuned per TPU generation."""
    kind = _device_kind()
    is_v7 = "v7" in kind
    # v7x: higher per-TC HBM BW -> bigger blocks; 16 MiB of input buffers fits
    # the 32 MiB scoped-VMEM default.  v5e (16 MiB scoped default) and v6e:
    # 4096-row blocks = 2 MiB/input/buffer = 8 MiB total with double-buffering.
    max_block_rows = 8192 if is_v7 else 4096
    # 2-way "parallel" grid axis only pays off on the 2-TC v7x chip.
    num_splits = 2 if (is_v7 and rows_raw >= 8 * SUBLANES) else 1
    return num_splits, max_block_rows


def _slab_geometry(n_elems, num_splits, max_block_rows):
    """Balanced, minimally-padded (rows, 128) slab geometry (static ints)."""
    rows_raw = pl.cdiv(n_elems, LANES)
    rows_per_split = pl.cdiv(rows_raw, num_splits)
    blocks_per_split = pl.cdiv(rows_per_split, max_block_rows)
    block_rows = pl.cdiv(pl.cdiv(rows_per_split, blocks_per_split),
                         ROW_ALIGN) * ROW_ALIGN
    rows = num_splits * blocks_per_split * block_rows
    return rows, block_rows, blocks_per_split


def _focal_elementwise(x, t, alpha, gamma):
    """Numerically-stable elementwise focal loss in f32 registers."""
    x = x.astype(jnp.float32)
    t = t.astype(jnp.float32)
    # torch.binary_cross_entropy_with_logits (reduction='none'):
    #   bce = max(x, 0) - x*t + log(1 + exp(-|x|))
    bce = jnp.maximum(x, 0.0) - x * t + jnp.log1p(jnp.exp(-jnp.abs(x)))
    pt = jnp.exp(-bce)
    omp = 1.0 - pt
    # Specialize common gammas away from jnp.power (log+exp on the EUP).
    if gamma == 0.0:
        mod = jnp.ones_like(omp)
    elif gamma == 1.0:
        mod = omp
    elif gamma == 2.0:
        mod = omp * omp
    elif gamma == 3.0:
        mod = omp * omp * omp
    elif gamma == 4.0:
        sq = omp * omp
        mod = sq * sq
    elif gamma == 0.5:
        mod = jnp.sqrt(jnp.maximum(omp, 0.0))
    else:
        # Clamp so non-integer gamma never sees a tiny negative base.
        mod = jnp.power(jnp.maximum(omp, 0.0), gamma)
    return alpha * mod * bce


def _focal_sum_kernel(x_ref, t_ref, out_ref, acc_ref, *,
                      alpha, gamma, inv_n, block_rows):
    j = pl.program_id(1)   # row-block index within this split ("arbitrary")

    @pl.when(j == 0)
    def _():
        acc_ref[...] = jnp.zeros_like(acc_ref)

    focal = _focal_elementwise(x_ref[...], t_ref[...], alpha, gamma)
    # Reduce the (block_rows, 128) tile into the one-vreg (8, 128) accumulator
    # sublane-group-wise (layout-clean: reshape does not cross (8,128) tiles).
    groups = block_rows // SUBLANES
    acc_ref[...] += focal.reshape(groups, SUBLANES, LANES).sum(axis=0)

    @pl.when(j == pl.num_programs(1) - 1)
    def _():
        # Emit this split's (scaled) partial sums; final tiny reduce in wrapper.
        out_ref[...] = acc_ref[...] * inv_n


def _focal_map_kernel(x_ref, t_ref, o_ref, *, alpha, gamma):
    o_ref[...] = _focal_elementwise(x_ref[...], t_ref[...], alpha,
                                    gamma).astype(o_ref.dtype)


def focal_loss(inputs, targets, alpha=1.0, gamma=2.0, reduction="mean"):
    """JAX/Pallas equivalent of FocalLoss.forward."""
    assert inputs.shape == targets.shape
    n_elems = inputs.size
    orig_shape = inputs.shape

    x = inputs.reshape(-1)
    t = targets.reshape(-1)

    rows_raw = pl.cdiv(n_elems, LANES)
    num_splits, max_block_rows = _chip_params(rows_raw)
    rows, block_rows, blocks_per_split = _slab_geometry(
        n_elems, num_splits, max_block_rows)
    padded = rows * LANES

    if padded != n_elems:
        # Tail-only pad in the original dtype; -1e4 logits make the padding
        # contribute exactly 0 focal loss (no in-kernel mask required).
        x = jnp.pad(x, (0, padded - n_elems), constant_values=_PAD_LOGIT)
        t = jnp.pad(t, (0, padded - n_elems))
    x = x.reshape(rows, LANES)
    t = t.reshape(rows, LANES)

    in_spec = pl.BlockSpec((block_rows, LANES),
                           lambda i, j: (i * blocks_per_split + j, 0))
    # TODO(synk): if a trace ever shows exposed DMA at block boundaries,
    # sweep pipeline_mode=pl.Buffered(3) on the two input BlockSpecs.

    if reduction in ("mean", "sum"):
        inv_n = 1.0 / float(n_elems) if reduction == "mean" else 1.0
        kernel = functools.partial(
            _focal_sum_kernel, alpha=float(alpha), gamma=float(gamma),
            inv_n=inv_n, block_rows=block_rows)
        partials = pl.pallas_call(
            kernel,
            out_shape=jax.ShapeDtypeStruct((num_splits * SUBLANES, LANES),
                                           jnp.float32),
            grid_spec=pltpu.PrefetchScalarGridSpec(
                num_scalar_prefetch=0,
                grid=(num_splits, blocks_per_split),
                in_specs=[in_spec, in_spec],
                out_specs=pl.BlockSpec((SUBLANES, LANES), lambda i, j: (i, 0)),
                scratch_shapes=[pltpu.VMEM((SUBLANES, LANES), jnp.float32)],
            ),
            compiler_params=pltpu.CompilerParams(
                dimension_semantics=("parallel", "arbitrary")),
        )(x, t)
        # Final (tiny) reduction of the distributed partial sums in f32.
        return jnp.sum(partials)

    if reduction == "none":
        out_dtype = inputs.dtype if jnp.issubdtype(inputs.dtype,
                                                   jnp.floating) else jnp.float32
        kernel = functools.partial(_focal_map_kernel, alpha=float(alpha),
                                   gamma=float(gamma))
        out = pl.pallas_call(
            kernel,
            out_shape=jax.ShapeDtypeStruct((rows, LANES), out_dtype),
            grid_spec=pltpu.PrefetchScalarGridSpec(
                num_scalar_prefetch=0,
                grid=(num_splits, blocks_per_split),
                in_specs=[in_spec, in_spec],
                out_specs=pl.BlockSpec((block_rows, LANES),
                                       lambda i, j: (i * blocks_per_split + j, 0)),
            ),
            compiler_params=pltpu.CompilerParams(
                dimension_semantics=("parallel", "parallel")),
        )(x, t)
        return out.reshape(-1)[:n_elems].reshape(orig_shape)

    raise ValueError(f"unknown reduction: {reduction!r}")


def _focal_loss_ref(inputs, targets, alpha=1.0, gamma=2.0, reduction="mean"):
    x = inputs.astype(jnp.float32)
    t = targets.astype(jnp.float32)
    bce = jnp.maximum(x, 0.0) - x * t + jnp.log1p(jnp.exp(-jnp.abs(x)))
    pt = jnp.exp(-bce)
    fl = alpha * (1.0 - pt) ** gamma * bce
    if reduction == "mean":
        return jnp.mean(fl)
    if reduction == "sum":
        return jnp.sum(fl)
    return fl


if __name__ == "__main__":
    key = jax.random.PRNGKey(0)
    k1, k2 = jax.random.split(key)

    # Primary small NCHW case (default mean reduction, gamma=2).
    x = jax.random.normal(k1, (2, 4, 16, 16), dtype=jnp.float32)
    t = (jax.random.uniform(k2, (2, 4, 16, 16)) > 0.5).astype(jnp.float32)
    loss = jax.block_until_ready(focal_loss(x, t, alpha=1.0, gamma=2.0))
    ref = _focal_loss_ref(x, t)
    assert jnp.allclose(loss, ref, rtol=1e-5, atol=1e-6), (loss, ref)

    # Non-default (integer-specialized) gamma.
    loss_g3 = jax.block_until_ready(focal_loss(x, t, alpha=0.25, gamma=3))
    ref_g3 = _focal_loss_ref(x, t, alpha=0.25, gamma=3)
    assert jnp.allclose(loss_g3, ref_g3, rtol=1e-5, atol=1e-6), (loss_g3, ref_g3)

    # Ragged case (exercises the -1e4 tail-padding path), sum reduction.
    k3, k4 = jax.random.split(k1)
    xr = jax.random.normal(k3, (2, 3, 5, 7), dtype=jnp.float32)
    tr = (jax.random.uniform(k4, (2, 3, 5, 7)) > 0.5).astype(jnp.float32)
    loss_r = jax.block_until_ready(focal_loss(xr, tr, reduction="sum"))
    ref_r = _focal_loss_ref(xr, tr, reduction="sum")
    assert jnp.allclose(loss_r, ref_r, rtol=1e-5, atol=1e-5), (loss_r, ref_r)

    # reduction='none' (elementwise output), ragged shape.
    fl_none = jax.block_until_ready(focal_loss(xr, tr, reduction="none"))
    ref_none = _focal_loss_ref(xr, tr, reduction="none")
    assert fl_none.shape == xr.shape
    assert jnp.allclose(fl_none, ref_none, rtol=1e-5, atol=1e-6)

    # Larger case (exercises big row blocks; 2-way TC split on v7x).
    k5, k6 = jax.random.split(k2)
    xl = jax.random.normal(k5, (2, 8, 128, 128), dtype=jnp.float32)
    tl = (jax.random.uniform(k6, (2, 8, 128, 128)) > 0.5).astype(jnp.float32)
    loss_l = jax.block_until_ready(focal_loss(xl, tl))
    ref_l = _focal_loss_ref(xl, tl)
    assert jnp.allclose(loss_l, ref_l, rtol=1e-5, atol=1e-6), (loss_l, ref_l)

    print("KERNEL_OK")
</pallas_src>

<mosaic_0001>
module attributes {stable_mosaic.version = 11 : i64} {
  func.func @_focal_sum_kernel(%arg0: i32, %arg1: i32, %arg2: memref<32x128xf32, #tpu.memory_space<vmem>>, %arg3: memref<32x128xf32, #tpu.memory_space<vmem>>, %arg4: memref<8x128xf32, #tpu.memory_space<vmem>>, %arg5: memref<8x128xf32, #tpu.memory_space<vmem>>) attributes {dimension_semantics = [#tpu.dimension_semantics<parallel>, #tpu.dimension_semantics<arbitrary>], iteration_bounds = array<i64: 1, 1>, scalar_prefetch = 0 : i64, scratch_operands = 1 : i64, tpu.core_type = #tpu.core_type<tc>, window_params = [{transform_indices = @transform_0, window_bounds = array<i64: 32, 128>}, {transform_indices = @transform_1, window_bounds = array<i64: 32, 128>}, {transform_indices = @transform_2, window_bounds = array<i64: 8, 128>}]} {
    %c0_i32 = arith.constant 0 : i32
    %0 = arith.cmpi eq, %arg1, %c0_i32 : i32
    %1 = arith.extui %0 : i1 to i32
    %c0_i32_0 = arith.constant 0 : i32
    %2 = arith.cmpi ne, %1, %c0_i32_0 : i32
    scf.if %2 {
      %cst_15 = arith.constant 0.000000e+00 : f32
      %32 = vector.broadcast %cst_15 : f32 to vector<8x128xf32>
      %c0_16 = arith.constant 0 : index
      %c0_17 = arith.constant 0 : index
      %33 = vector.load %arg5[%c0_16, %c0_17] : memref<8x128xf32, #tpu.memory_space<vmem>>, vector<8x128xf32>
      tpu.vector_store %arg5[%c0_16, %c0_17], %32 {strides = array<i32>} : memref<8x128xf32, #tpu.memory_space<vmem>>, vector<8x128xf32>,
    } else {
    }
    %c0 = arith.constant 0 : index
    %c0_1 = arith.constant 0 : index
    %3 = vector.load %arg2[%c0, %c0_1] : memref<32x128xf32, #tpu.memory_space<vmem>>, vector<32x128xf32>
    %c0_2 = arith.constant 0 : index
    %c0_3 = arith.constant 0 : index
    %4 = vector.load %arg3[%c0_2, %c0_3] : memref<32x128xf32, #tpu.memory_space<vmem>>, vector<32x128xf32>
    %cst = arith.constant 0.000000e+00 : f32
    %5 = vector.broadcast %cst : f32 to vector<32x128xf32>
    %6 = arith.maximumf %3, %5 : vector<32x128xf32>
    %7 = arith.mulf %3, %4 : vector<32x128xf32>
    %8 = arith.subf %6, %7 : vector<32x128xf32>
    %9 = math.absf %3 : vector<32x128xf32>
    %cst_4 = arith.constant 0.000000e+00 : f32
    %10 = vector.broadcast %cst_4 : f32 to vector<32x128xf32>
    %11 = arith.subf %10, %9 : vector<32x128xf32>
    %12 = math.exp %11 : vector<32x128xf32>
    %13 = math.log1p %12 : vector<32x128xf32>
    %14 = arith.addf %8, %13 : vector<32x128xf32>
    %cst_5 = arith.constant 0.000000e+00 : f32
    %15 = vector.broadcast %cst_5 : f32 to vector<32x128xf32>
    %16 = arith.subf %15, %14 : vector<32x128xf32>
    %17 = math.exp %16 : vector<32x128xf32>
    %cst_6 = arith.constant 1.000000e+00 : f32
    %18 = vector.broadcast %cst_6 : f32 to vector<32x128xf32>
    %19 = arith.subf %18, %17 : vector<32x128xf32>
    %20 = arith.mulf %19, %19 : vector<32x128xf32>
    %cst_7 = arith.constant 1.000000e+00 : f32
    %21 = vector.broadcast %cst_7 : f32 to vector<32x128xf32>
    %22 = arith.mulf %21, %20 : vector<32x128xf32>
    %23 = arith.mulf %22, %14 : vector<32x128xf32>
    %c0_8 = arith.constant 0 : index
    %c0_9 = arith.constant 0 : index
    %24 = vector.load %arg5[%c0_8, %c0_9] : memref<8x128xf32, #tpu.memory_space<vmem>>, vector<8x128xf32>
    %25 = vector.shape_cast %23 : vector<32x128xf32> to vector<4x8x128xf32>
    %cst_10 = arith.constant dense<0.000000e+00> : vector<8x128xf32>
    %26 = vector.multi_reduction <add>, %25, %cst_10 [0] : vector<4x8x128xf32> to vector<8x128xf32>
    %27 = arith.addf %24, %26 : vector<8x128xf32>
    %c0_11 = arith.constant 0 : index
    %c0_12 = arith.constant 0 : index
    %28 = vector.load %arg5[%c0_11, %c0_12] : memref<8x128xf32, #tpu.memory_space<vmem>>, vector<8x128xf32>
    tpu.vector_store %arg5[%c0_11, %c0_12], %27 {strides = array<i32>} : memref<8x128xf32, #tpu.memory_space<vmem>>, vector<8x128xf32>,
    %c0_i32_13 = arith.constant 0 : i32
    %29 = arith.cmpi eq, %arg1, %c0_i32_13 : i32
    %30 = arith.extui %29 : i1 to i32
    %c0_i32_14 = arith.constant 0 : i32
    %31 = arith.cmpi ne, %30, %c0_i32_14 : i32
    scf.if %31 {
      %c0_15 = arith.constant 0 : index
      %c0_16 = arith.constant 0 : index
      %32 = vector.load %arg5[%c0_15, %c0_16] : memref<8x128xf32, #tpu.memory_space<vmem>>, vector<8x128xf32>
      %cst_17 = arith.constant 4.8828125E-4 : f32
      %33 = vector.broadcast %cst_17 : f32 to vector<8x128xf32>
      %34 = arith.mulf %32, %33 : vector<8x128xf32>
      %c0_18 = arith.constant 0 : index
      %c0_19 = arith.constant 0 : index
      %35 = vector.load %arg4[%c0_18, %c0_19] : memref<8x128xf32, #tpu.memory_space<vmem>>, vector<8x128xf32>
      tpu.vector_store %arg4[%c0_18, %c0_19], %34 {strides = array<i32>} : memref<8x128xf32, #tpu.memory_space<vmem>>, vector<8x128xf32>,
    } else {
    }
    return
  }
  func.func @transform_0(%arg0: i32, %arg1: i32) -> (i32, i32) {
    %c1_i32 = arith.constant 1 : i32
    %0 = arith.muli %arg0, %c1_i32 : i32
    %1 = arith.addi %0, %arg1 : i32
    %c0_i32 = arith.constant 0 : i32
    %c0_i32_0 = arith.constant 0 : i32
    return %1, %c0_i32 : i32, i32
  }
  func.func @transform_1(%arg0: i32, %arg1: i32) -> (i32, i32) {
    %c1_i32 = arith.constant 1 : i32
    %0 = arith.muli %arg0, %c1_i32 : i32
    %1 = arith.addi %0, %arg1 : i32
    %c0_i32 = arith.constant 0 : i32
    %c0_i32_0 = arith.constant 0 : i32
    return %1, %c0_i32 : i32, i32
  }
  func.func @transform_2(%arg0: i32, %arg1: i32) -> (i32, i32) {
    %c0_i32 = arith.constant 0 : i32
    %c0_i32_0 = arith.constant 0 : i32
    return %arg0, %c0_i32 : i32, i32
  }
}

</mosaic_0001>

<bundles_post_ra>
// kernel: tpu_custom_call.1
= control target key start
LH: loop header
LB: loop body
LE: loop exit
PB: predicated region body
PF: predicated region fallthrough
CT: control target
= control target key end

     0   :  { %7 = vsyncpa [#allocation4], 0  ;;  %s364_s0 = inlined_call_operand.hbm [shape: f32[32,128], index: 0, kind: input, shape index: {}]   ;;  %s365_s1 = inlined_call_operand.hbm [shape: f32[32,128], index: 1, kind: input, shape index: {}]   ;;  %s366_s2 = inlined_call_operand.hbm [shape: f32[8,128], index: 2, kind: output, shape index: {}]  }
   0x1   :  { %8 = vsyncpa [#allocation7], 0 }
   0x2   :  { %9 = vsyncpa [#allocation5], 0  ;;  %s286_s9 = smov [#allocation3]   ;;  %s214_s13 = scalar_lea.hbm %s364_s0, 512 }
   0x3   :  { %s19_s10 = sshll.u32 %s286_s9, 4  ;;  %p215_p0 = scmp.ne.s32.totalorder %s364_s0, %s214_s13  ;;  %s20_s10 = int_to_ptr.vmem [resolvable:$true] %s19_s10 }
   0x4   :  { %p218_p1 = scmp.lt.u32.totalorder %s214_s13, %s364_s0 }
   0x6   :  { %p220_p2 = pnand %p218_p1, %p215_p0 }
   0x8   :  { %223 = shalt.err (!%p220_p2)
}
   0x9   :  { %s224_s18 = scalar_lea.vmem %s20_s10, 512  ;;  %p229_p4 = scmp.lt.s32.totalorder %s20_s10, %s20_s10 }
   0xa   :  { %p225_p3 = scmp.ne.s32.totalorder %s20_s10, %s224_s18  ;;  %p230_p5 = scmp.lt.s32.totalorder %s224_s18, %s224_s18 }
   0xc   :  { %p231_p6 = por %p230_p5, %p229_p4 }
   0xe   :  { %p232_p7 = pnand %p231_p6, %p225_p3 }
  0x10   :  { %235 = shalt.err (!%p232_p7)
}
  0x11   :  { %s287_s19 = smov 128   ;;  %s288_s20 = smov 8  }
  0x12   :  { %25 = dma.hbm_to_vmem [thread:$0]  %s364_s0, 512, %s20_s10, [#allocation4], %s287_s19, %s287_s19, %s288_s20  }
  0x13   :  { %s289_s23 = smov [#allocation6]   ;;  %s236_s27 = scalar_lea.hbm %s365_s1, 512 }
  0x14   :  { %s35_s24 = sshll.u32 %s289_s23, 4  ;;  %p237_p8 = scmp.ne.s32.totalorder %s365_s1, %s236_s27  ;;  %s36_s24 = int_to_ptr.vmem [resolvable:$true] %s35_s24 }
  0x15   :  { %p240_p9 = scmp.lt.u32.totalorder %s236_s27, %s365_s1 }
  0x17   :  { %p242_p10 = pnand %p240_p9, %p237_p8 }
  0x19   :  { %245 = shalt.err (!%p242_p10)
}
  0x1a   :  { %s246_s4 = scalar_lea.vmem %s36_s24, 512  ;;  %p251_p12 = scmp.lt.s32.totalorder %s36_s24, %s36_s24 }
  0x1b   :  { %p247_p11 = scmp.ne.s32.totalorder %s36_s24, %s246_s4  ;;  %p252_p13 = scmp.lt.s32.totalorder %s246_s4, %s246_s4 }
  0x1d   :  { %p253_p0 = por %p252_p13, %p251_p12 }
  0x1f   :  { %p254_p1 = pnand %p253_p0, %p247_p11 }
  0x21   :  { %257 = shalt.err (!%p254_p1)
}
  0x22   :  { %41 = dma.hbm_to_vmem [thread:$0]  %s365_s1, 512, %s36_s24, [#allocation7], %s287_s19, %s287_s19, %s288_s20  }
  0x23   :  { %280 = dma.done.wait [#allocation4], 512  }
  0x24   :  { %281 = vsyncadd [#allocation4], 4294966784 }
  0x25   :  { %282 = dma.done.wait [#allocation7], 512  }
  0x26   :  { %283 = vsyncadd [#allocation7], 4294966784  ;;  %v57_v0 = vld [vmem:[#allocation3] sm:$0xff]  ;;  %v58_v1 = vld [vmem:[#allocation3 + $0x8] sm:$0xff]  ;;  %s290_s1 = smov [#allocation8]  }
  0x27   :  { %v330_v2 = vld [vmem:[#allocation3 + $0x10] sm:$0xff]  ;;  %v332_v3 = vld [vmem:[#allocation3 + $0x18] sm:$0xff]  ;;  %v77_v4 = vand.u32 2147483647, %v57_v0  ;;  %v78_v5 = vand.u32 2147483647, %v58_v1 }
  0x28   :  { %v79_v6 = vand.u32 2147483647, %v330_v2  ;;  %v80_v7 = vand.u32 2147483647, %v332_v3  ;;  %v61_v26 = vld [vmem:[#allocation6] sm:$0xff]  ;;  %v62_v28 = vld [vmem:[#allocation6 + $0x8] sm:$0xff] }
  0x29   :  { %v81_v8 = vsub.f32 0.0, %v77_v4  ;;  %v82_v9 = vsub.f32 0.0, %v78_v5  ;;  %v63_v29 = vld [vmem:[#allocation6 + $0x10] sm:$0xff]  ;;  %v64_v32 = vld [vmem:[#allocation6 + $0x18] sm:$0xff]  ;;  %v65_v33 = vmax.f32 %v57_v0, 0.0  ;;  %v69_v34 = vmul.f32 %v61_v26, %v57_v0  ;;  %s175_s6 = sshll.u32 %s290_s1, 4  ;;  %s176_s6 = int_to_ptr.vmem [resolvable:$true] %s175_s6 }
  0x2a   :  { %v83_v10 = vsub.f32 0.0, %v79_v6  ;;  %v84_v11 = vsub.f32 0.0, %v80_v7  ;;  %v66_v37 = vmax.f32 %v58_v1, 0.0  ;;  %v70_v38 = vmul.f32 %v62_v28, %v58_v1  ;;  %s258_s7 = scalar_lea.vmem %s176_s6, 128  ;;  %p263_p3 = scmp.lt.s32.totalorder %s176_s6, %s176_s6 }
  0x2b   :  { %v85_v12 = vmul.f32 1.442695, %v81_v8  ;;  %v87_v13 = vmul.f32 1.442695, %v82_v9  ;;  %v67_v41 = vmax.f32 %v330_v2, 0.0  ;;  %v71_v42 = vmul.f32 %v63_v29, %v330_v2  ;;  %p259_p2 = scmp.ne.s32.totalorder %s176_s6, %s258_s7  ;;  %p264_p4 = scmp.lt.s32.totalorder %s258_s7, %s258_s7 }
  0x2c   :  { %v89_v14 = vmul.f32 1.442695, %v83_v10  ;;  %v91_v15 = vmul.f32 1.442695, %v84_v11  ;;  %v68_v44 = vmax.f32 %v332_v3, 0.0  ;;  %v72_v45 = vmul.f32 %v64_v32, %v332_v3 }
  0x2d   :  { %190 = vpow2.f32 %v85_v12  ;;  %v73_v49 = vsub.f32 %v65_v33, %v69_v34  ;;  %v74_v54 = vsub.f32 %v66_v37, %v70_v38  ;;  %v75_v59 = vsub.f32 %v67_v41, %v71_v42  ;;  %p265_p5 = por %p264_p4, %p263_p3 }
  0x2e   :  { %192 = vpow2.f32 %v87_v13  ;;  %v76_v1 = vsub.f32 %v68_v44, %v72_v45 }
  0x2f   :  { %194 = vpow2.f32 %v89_v14  ;;  %p266_p6 = pnand %p265_p5, %p259_p2 }
  0x30   :  { %196 = vpow2.f32 %v91_v15 }
  0x37   :  { %v191_v16 = vpop.eup %190 }
  0x38   :  { %v193_v17 = vpop.eup %192  ;;  %v93_v18 = vadd.f32 1.0, %v191_v16  ;;  %v96_v23 = vmul.f32 -0.5, %v191_v16  ;;  %v99_v35 = vand.u32 2147483647, %v191_v16 }
  0x39   :  { %v195_v19 = vpop.eup %194  ;;  %v102_v20 = vadd.f32 1.0, %v193_v17  ;;  %v105_v24 = vmul.f32 -0.5, %v193_v17  ;;  %v108_v39 = vand.u32 2147483647, %v193_v17 }
  0x3a   :  { %v197_v21 = vpop.eup %196  ;;  %198 = vlog2.f32 %v93_v18  ;;  %v111_v22 = vadd.f32 1.0, %v195_v19  ;;  %v114_v27 = vmul.f32 -0.5, %v195_v19  ;;  %v97_v30 = vadd.f32 1.0, %v96_v23 }
  0x3b   :  { %200 = vlog2.f32 %v102_v20  ;;  %v120_v25 = vadd.f32 1.0, %v197_v21  ;;  %v123_v31 = vmul.f32 -0.5, %v197_v21  ;;  %v106_v36 = vadd.f32 1.0, %v105_v24 }
  0x3c   :  { %202 = vlog2.f32 %v111_v22  ;;  %v115_v40 = vadd.f32 1.0, %v114_v27  ;;  %v117_v43 = vand.u32 2147483647, %v195_v19  ;;  %v98_v46 = vmul.f32 %v191_v16, %v97_v30 }
  0x3d   :  { %204 = vlog2.f32 %v120_v25  ;;  %v124_v47 = vadd.f32 1.0, %v123_v31  ;;  %vm340_vm0 = vcmp.lt.f32.partialorder %v99_v35, 0.0004427343  ;;  %v107_v51 = vmul.f32 %v193_v17, %v106_v36 }
  0x3e   :  { %v126_v52 = vand.u32 2147483647, %v197_v21  ;;  %vm344_vm1 = vcmp.lt.f32.partialorder %v108_v39, 0.0004427343  ;;  %v116_v57 = vmul.f32 %v195_v19, %v115_v40  ;;  %vm118_vm2 = vcmp.lt.f32.partialorder %v117_v43, 0.0004427343 }
  0x3f   :  { %v125_v63 = vmul.f32 %v197_v21, %v124_v47 }
  0x40   :  { %vm127_vm3 = vcmp.lt.f32.partialorder %v126_v52, 0.0004427343 }
  0x44   :  { %v199_v48 = vpop.eup %198 }
  0x45   :  { %v201_v53 = vpop.eup %200  ;;  %v95_v55 = vmul.f32 0.6931472, %v199_v48 }
  0x46   :  { %v203_v58 = vpop.eup %202  ;;  %v104_v60 = vmul.f32 0.6931472, %v201_v53 }
  0x47   :  { %v101_v61 = vsel %vm340_vm0, %v98_v46, %v95_v55  ;;  %v113_v62 = vmul.f32 0.6931472, %v203_v58  ;;  %v205_v0 = vpop.eup %204 }
  0x48   :  { %v110_v2 = vsel %vm344_vm1, %v107_v51, %v104_v60  ;;  %v129_v3 = vadd.f32 %v101_v61, %v73_v49  ;;  %v122_v5 = vmul.f32 0.6931472, %v205_v0 }
  0x49   :  { %v119_v4 = vsel %vm118_vm2, %v116_v57, %v113_v62  ;;  %v130_v6 = vadd.f32 %v110_v2, %v74_v54 }
  0x4a   :  { %v131_v7 = vadd.f32 %v119_v4, %v75_v59  ;;  %v133_v8 = vsub.f32 0.0, %v129_v3  ;;  %v128_v9 = vsel %vm127_vm3, %v125_v63, %v122_v5 }
  0x4b   :  { %v134_v10 = vsub.f32 0.0, %v130_v6  ;;  %v132_v11 = vadd.f32 %v128_v9, %v76_v1 }
  0x4c   :  { %v135_v12 = vsub.f32 0.0, %v131_v7  ;;  %v137_v13 = vmul.f32 1.442695, %v133_v8 }
  0x4d   :  { %v139_v14 = vmul.f32 1.442695, %v134_v10  ;;  %v136_v15 = vsub.f32 0.0, %v132_v11 }
  0x4e   :  { %206 = vpow2.f32 %v137_v13  ;;  %v141_v16 = vmul.f32 1.442695, %v135_v12 }
  0x4f   :  { %208 = vpow2.f32 %v139_v14  ;;  %v143_v17 = vmul.f32 1.442695, %v136_v15 }
  0x50   :  { %210 = vpow2.f32 %v141_v16 }
  0x51   :  { %212 = vpow2.f32 %v143_v17 }
  0x58   :  { %v207_v18 = vpop.eup %206 }
  0x59   :  { %v209_v19 = vpop.eup %208  ;;  %v145_v20 = vsub.f32 1.0, %v207_v18 }
  0x5a   :  { %v211_v21 = vpop.eup %210  ;;  %v146_v22 = vsub.f32 1.0, %v209_v19 }
  0x5b   :  { %v147_v23 = vsub.f32 1.0, %v211_v21  ;;  %v149_v24 = vmul.f32 %v145_v20, %v145_v20  ;;  %v213_v25 = vpop.eup %212 }
  0x5c   :  { %v150_v26 = vmul.f32 %v146_v22, %v146_v22  ;;  %v148_v27 = vsub.f32 1.0, %v213_v25 }
  0x5d   :  { %v151_v28 = vmul.f32 %v147_v23, %v147_v23  ;;  %v153_v29 = vmul.f32 %v149_v24, %v129_v3 }
  0x5e   :  { %v154_v30 = vmul.f32 %v150_v26, %v130_v6  ;;  %v152_v31 = vmul.f32 %v148_v27, %v148_v27 }
  0x5f   :  { %v155_v32 = vmul.f32 %v151_v28, %v131_v7 }
  0x60   :  { %v158_v33 = vadd.f32 %v154_v30, %v153_v29  ;;  %v156_v34 = vmul.f32 %v152_v31, %v132_v11 }
  0x62   :  { %v159_v35 = vadd.f32 %v158_v33, %v155_v32 }
  0x64   :  { %v160_v36 = vadd.f32 %v159_v35, %v156_v34 }
  0x66   :  { %v167_v37 = vmul.f32 0.00048828125, %v160_v36 }
  0x68   :  { %168 = vst [vmem:[#allocation8] sm:$0xff] %v167_v37 }
  0x69   :  { %269 = shalt.err (!%p266_p6)
}
  0x6a   :  { %s270_s10 = scalar_lea.hbm %s366_s2, 128 }
  0x6b   :  { %p271_p7 = scmp.ne.s32.totalorder %s366_s2, %s270_s10  ;;  %p274_p8 = scmp.lt.u32.totalorder %s270_s10, %s366_s2 }
  0x6d   :  { %p276_p9 = pnand %p274_p8, %p271_p7 }
  0x6f   :  { %279 = shalt.err (!%p276_p9)
}
  0x70   :  { %178 = dma.vmem_to_hbm [thread:$0]  %s176_s6, 128, %s366_s2, [#allocation5]  }
  0x71   :  { %284 = dma.done.wait [#allocation5], 128  }
  0x72   :  { %285 = vsyncadd [#allocation5], 4294967168 }
  0x73   :  { %182 = vsyncpa [#allocation4], 1 }
  0x74   :  { %183 = vsyncpa [#allocation7], 1 }
  0x75   :  { %184 = vsyncpa [#allocation5], 1 }

</bundles_post_ra>
